<compile_context>
chip_gen: v6e
topology: v6e:2x2x1
jax: 0.10.0
libtpu: 0.0.40
codegen_flags: <defaults>
</compile_context>

<pallas_src>
import jax
import jax.numpy as jnp
from jax.experimental import pallas as pl
from jax.experimental.pallas import tpu as pltpu


def _round_up(a: int, b: int) -> int:
    return (a + b - 1) // b * b


_TILE_CANDS = (512, 384, 256, 128, 64, 32, 16)
_VMEM_BUDGET = 12 * 1024 * 1024   # per-step buffer budget (fits v5e 16 MiB scoped)
_VMEM_LIMIT = 48 * 1024 * 1024    # explicit scoped limit, <= v7x 64 MiB physical
_RESIDENT_W_BYTES = 8 * 1024 * 1024  # keep weight VMEM-resident below this


def _pick_divisor_tile(padded: int, candidates) -> int:
    for c in candidates:
        if c <= padded and padded % c == 0:
            return c
    return padded


def _pick_m_tile(m_base: int, fits):
    """Pick (tm, m_pad): biggest tile whose padding waste is bounded and fits VMEM."""
    if m_base <= 512 and fits(m_base):
        return m_base, m_base                      # single full-extent tile
    max_waste = max(m_base // 8, 16)
    for c in _TILE_CANDS:
        padded = _round_up(m_base, c)
        if padded - m_base > max_waste:
            continue
        if fits(c):
            return c, padded
    return 16, _round_up(m_base, 16)               # conservative fallback


# ---------------------------------------------------------------------------
# Kernels
# ---------------------------------------------------------------------------
def _fullk_resident_kernel(x_ref, w_ref, o_ref):
    """Fast path: full K, weight VMEM-resident (constant index_map).

    x_ref: (tm, K) bf16 ; w_ref: (K, N) bf16 ; o_ref: (tm, N) out dtype.
    """
    o_ref[...] = jnp.dot(
        x_ref[...], w_ref[...], preferred_element_type=jnp.float32
    ).astype(o_ref.dtype)


def _tiled_kernel_f32out(x_ref, w_ref, o_ref):
    """General path, f32 output: accumulate directly into the resident o_ref."""
    k = pl.program_id(2)

    @pl.when(k == 0)
    def _():
        o_ref[...] = jnp.zeros_like(o_ref)

    o_ref[...] += jnp.dot(x_ref[...], w_ref[...],
                          preferred_element_type=jnp.float32)


def _tiled_kernel_acc(x_ref, w_ref, o_ref, acc_ref):
    """General path, narrow output dtype: f32 scratch accumulator."""
    k = pl.program_id(2)

    @pl.when(k == 0)
    def _():
        acc_ref[...] = jnp.zeros_like(acc_ref)

    acc_ref[...] += jnp.dot(x_ref[...], w_ref[...],
                            preferred_element_type=jnp.float32)

    @pl.when(k == pl.num_programs(2) - 1)
    def _():
        o_ref[...] = acc_ref[...].astype(o_ref.dtype)


# ---------------------------------------------------------------------------
# Wrapper
# ---------------------------------------------------------------------------
@jax.jit
def reverse_attention(x, weight):
    """Pallas equivalent of ReverseAttention.forward: x @ weight.T (no bias).

    x:      (..., source_num_nodes)
    weight: (target_num_nodes, source_num_nodes)
    Returns an array with x.dtype (bf16 compute on the MXU, f32 accumulation).
    """
    *lead, k_dim = x.shape
    n_dim, k_w = weight.shape
    assert k_dim == k_w, "source_num_nodes mismatch"

    out_dtype = x.dtype
    out_size = jnp.dtype(out_dtype).itemsize

    m_dim = 1
    for d in lead:
        m_dim *= d

    # ---- padded logical dims (lane-dense output; bounded padding) ----
    m_base = max(_round_up(m_dim, 16), 16)               # bf16 sublane packing
    n_pad = _round_up(max(n_dim, 128), 128)               # lane-dense output
    k_pad = k_dim if k_dim <= 256 else _round_up(k_dim, 128)

    w_bytes = k_pad * n_pad * 2                            # bf16 weight in VMEM

    # ---- path / tile selection (all static Python) ----
    use_resident = (2 * w_bytes) <= _RESIDENT_W_BYTES      # count possible dbuf

    if use_resident:
        def _fits(tm):
            return (2 * tm * k_pad * 2            # x, double-buffered bf16
                    + 2 * tm * n_pad * out_size   # out, double-buffered
                    + 2 * w_bytes) <= _VMEM_BUDGET
        tm, m_pad = _pick_m_tile(m_base, _fits)
        # v7x megacore: give the single "parallel" axis >= 2 tiles when possible.
        if m_pad // tm == 1 and m_pad % 32 == 0:
            tm = m_pad // 2
        tn, tk = n_pad, k_pad
        acc_needed = False
    else:
        tn = _pick_divisor_tile(n_pad, (512, 384, 256, 128))
        tk = k_pad if k_pad <= 512 else _pick_divisor_tile(k_pad, (512, 384, 256, 128))
        acc_needed = out_dtype != jnp.float32

        def _fits(tm):
            b = (2 * tm * tk * 2 + 2 * tk * tn * 2 + 2 * tm * tn * out_size)
            if acc_needed:
                b += tm * tn * 4
            return b <= _VMEM_BUDGET
        tm, m_pad = _pick_m_tile(m_base, _fits)

    # ---- bf16 cast, (K, N) weight layout, padding (fuses with the cast) ----
    x2d = x.reshape(m_dim, k_dim).astype(jnp.bfloat16)
    wkn = weight.T.astype(jnp.bfloat16)
    if (m_pad, k_pad) != (m_dim, k_dim):
        x2d = jnp.pad(x2d, ((0, m_pad - m_dim), (0, k_pad - k_dim)))
    if (k_pad, n_pad) != (k_dim, n_dim):
        wkn = jnp.pad(wkn, ((0, k_pad - k_dim), (0, n_pad - n_dim)))

    flops = 2 * m_pad * n_pad * k_pad

    if use_resident:
        grid = (m_pad // tm,)
        cost = pl.CostEstimate(
            flops=flops,
            transcendentals=0,
            bytes_accessed=(m_pad * k_pad * 2          # x read once
                            + w_bytes                  # weight read once (resident)
                            + m_pad * n_pad * out_size),
        )
        out2d = pl.pallas_call(
            _fullk_resident_kernel,
            out_shape=jax.ShapeDtypeStruct((m_pad, n_pad), out_dtype),
            grid_spec=pltpu.PrefetchScalarGridSpec(
                num_scalar_prefetch=0,
                grid=grid,
                in_specs=[
                    pl.BlockSpec((tm, k_pad), lambda i: (i, 0)),      # x  (M, K)
                    pl.BlockSpec((k_pad, n_pad), lambda i: (0, 0)),   # W  (K, N) resident
                ],
                out_specs=pl.BlockSpec((tm, n_pad), lambda i: (i, 0)),
            ),
            compiler_params=pltpu.CompilerParams(
                dimension_semantics=("parallel",),
                vmem_limit_bytes=_VMEM_LIMIT,
            ),
            cost_estimate=cost,
        )(x2d, wkn)
    else:
        grid = (m_pad // tm, n_pad // tn, k_pad // tk)
        cost = pl.CostEstimate(
            flops=flops,
            transcendentals=0,
            bytes_accessed=(grid[1] * m_pad * k_pad * 2    # x re-streamed per N tile
                            + grid[0] * k_pad * n_pad * 2  # W re-streamed per M tile
                            + m_pad * n_pad * out_size),
        )
        kernel = _tiled_kernel_acc if acc_needed else _tiled_kernel_f32out
        scratch = [pltpu.VMEM((tm, tn), jnp.float32)] if acc_needed else []
        out2d = pl.pallas_call(
            kernel,
            out_shape=jax.ShapeDtypeStruct((m_pad, n_pad), out_dtype),
            grid_spec=pltpu.PrefetchScalarGridSpec(
                num_scalar_prefetch=0,
                grid=grid,
                in_specs=[
                    pl.BlockSpec((tm, tk), lambda i, j, k: (i, k)),   # x (M, K)
                    pl.BlockSpec((tk, tn), lambda i, j, k: (k, j)),   # W (K, N)
                ],
                out_specs=pl.BlockSpec((tm, tn), lambda i, j, k: (i, j)),
                scratch_shapes=scratch,
            ),
            compiler_params=pltpu.CompilerParams(
                dimension_semantics=("parallel", "parallel", "arbitrary"),
                vmem_limit_bytes=_VMEM_LIMIT,
            ),
            cost_estimate=cost,
        )(x2d, wkn)

    if (m_pad, n_pad) != (m_dim, n_dim):
        out2d = out2d[:m_dim, :n_dim]
    return out2d.reshape(*lead, n_dim)


if __name__ == "__main__":
    # ReverseAttention(source_num_nodes=32, target_num_nodes=16)
    source_num_nodes = 32
    target_num_nodes = 16
    batch, seq = 2, 8

    key = jax.random.PRNGKey(0)
    kx, kw = jax.random.split(key)

    x = jax.random.normal(kx, (batch, seq, source_num_nodes), dtype=jnp.float32)
    # Deterministic Kaiming-uniform-like init (matches nn.Linear default bound).
    bound = 1.0 / (source_num_nodes ** 0.5)
    weight = jax.random.uniform(
        kw, (target_num_nodes, source_num_nodes),
        minval=-bound, maxval=bound, dtype=jnp.float32,
    )

    out = reverse_attention(x, weight)
    out = jax.block_until_ready(out)
    assert out.shape == (batch, seq, target_num_nodes)

    # Reference at matched (bf16-input, f32-accumulate) precision — tight check.
    xb = x.astype(jnp.bfloat16).astype(jnp.float32)
    wb = weight.astype(jnp.bfloat16).astype(jnp.float32)
    ref_matched = jnp.einsum("bsk,nk->bsn", xb, wb)
    assert jnp.allclose(out, ref_matched, atol=1e-4, rtol=1e-4)

    # Loose check against the exact f32 reference (bf16 rounding of inputs only).
    ref_f32 = jnp.einsum("bsk,nk->bsn", x, weight)
    assert jnp.allclose(out, ref_f32, atol=5e-2, rtol=5e-2)

    print("KERNEL_OK")
</pallas_src>

<mosaic_0001>
module attributes {stable_mosaic.version = 11 : i64} {
  func.func @_fullk_resident_kernel(%arg0: i32, %arg1: memref<16x32xbf16, #tpu.memory_space<vmem>>, %arg2: memref<32x128xbf16, #tpu.memory_space<vmem>>, %arg3: memref<16x128xf32, #tpu.memory_space<vmem>>) attributes {dimension_semantics = [#tpu.dimension_semantics<parallel>], iteration_bounds = array<i64: 1>, scalar_prefetch = 0 : i64, scratch_operands = 0 : i64, tpu.core_type = #tpu.core_type<tc>, window_params = [{transform_indices = @transform_0, window_bounds = array<i64: 16, 32>}, {pipeline_mode = #tpu.pipeline_mode<synchronous>, transform_indices = @transform_1, window_bounds = array<i64: 32, 128>}, {transform_indices = @transform_2, window_bounds = array<i64: 16, 128>}]} {
    %c0 = arith.constant 0 : index
    %c0_0 = arith.constant 0 : index
    %0 = vector.load %arg1[%c0, %c0_0] : memref<16x32xbf16, #tpu.memory_space<vmem>>, vector<16x32xbf16>
    %c0_1 = arith.constant 0 : index
    %c0_2 = arith.constant 0 : index
    %1 = vector.load %arg2[%c0_1, %c0_2] : memref<32x128xbf16, #tpu.memory_space<vmem>>, vector<32x128xbf16>
    %cst = arith.constant dense<0.000000e+00> : vector<16x128xf32>
    %2 = tpu.matmul %0, %1, %cst {dimension_numbers = #tpu.dot_dimension_numbers<[1], [0], [0], [1], [0, 0, 1, 1], [], []>} : vector<16x32xbf16>, vector<32x128xbf16>, vector<16x128xf32> -> vector<16x128xf32>
    %c0_3 = arith.constant 0 : index
    %c0_4 = arith.constant 0 : index
    %3 = vector.load %arg3[%c0_3, %c0_4] : memref<16x128xf32, #tpu.memory_space<vmem>>, vector<16x128xf32>
    tpu.vector_store %arg3[%c0_3, %c0_4], %2 {strides = array<i32>} : memref<16x128xf32, #tpu.memory_space<vmem>>, vector<16x128xf32>,
    return
  }
  func.func @transform_0(%arg0: i32) -> (i32, i32) {
    %c0_i32 = arith.constant 0 : i32
    %c0_i32_0 = arith.constant 0 : i32
    return %arg0, %c0_i32 : i32, i32
  }
  func.func @transform_1(%arg0: i32) -> (i32, i32) {
    %c0_i32 = arith.constant 0 : i32
    %c0_i32_0 = arith.constant 0 : i32
    %c0_i32_1 = arith.constant 0 : i32
    return %c0_i32, %c0_i32_0 : i32, i32
  }
  func.func @transform_2(%arg0: i32) -> (i32, i32) {
    %c0_i32 = arith.constant 0 : i32
    %c0_i32_0 = arith.constant 0 : i32
    return %arg0, %c0_i32 : i32, i32
  }
}

</mosaic_0001>

<bundles_post_ra>
// kernel: reverse_attention.1
= control target key start
LH: loop header
LB: loop body
LE: loop exit
PB: predicated region body
PF: predicated region fallthrough
CT: control target
= control target key end

     0   :  { %v106_v0 = vmov 0.0   ;;  %vm107_vm0 = vmmov 0   ;;  %vm35_vm1 = vcmask 261120   ;;  %s138_s1 = inlined_call_operand.vmem [shape: bf16[32,128], index: 1, kind: input, shape index: {}]   ;;  %s139_s0 = inlined_call_operand.vmem [shape: bf16[16,32], index: 0, kind: input, shape index: {}]   ;;  %s140_s2 = inlined_call_operand.vmem [shape: f32[16,128], index: 2, kind: output, shape index: {}]  }
   0x1   :  { %93 = vmatprep.subr.bf16.mxu0 %v106_v0  ;;  %v103_v1 = vld [vmem:[%s138_s1 + $0x8] sm:$0xff]   ;;  %97 = vmatprep.mubr.msk.bf16.mxu0 %vm107_vm0, %v106_v0  ;;  %v104_v2 = vld [vmem:[%s138_s1] sm:$0xff]  }
   0x2   :  { %94 = vmatpush3.bf16.msra.mxu0 %v103_v1  ;;  %v105_v3 = vld [vmem:[%s139_s0] sm:$0xff]  }
   0x3   :  { %95 = vmatprep.subr.bf16.mxu0 %v106_v0 }
   0x6   :  { %96 = vmatpush3.bf16.msra.mxu0 %v104_v2 }
   0x9   :  { %98 = vmatmul.mubr.msk.bf16.vlgmr.msra.gmra.mxu0 %vm35_vm1, %v105_v3 }
  0xc9   :  { %v73_v4 = vpop.f32.mrf.mxu0 }
  0xca   :  { %80 = vst [vmem:[%s140_s2] sm:$0xff] %v73_v4 }
  0xcb   :  { %v99_v5 = vpop.f32.mrf.mxu0 }
  0xcd   :  { %v76_v6 = vpop.f32.mrf.mxu0 }
  0xce   :  { %81 = vst [vmem:[%s140_s2 + $0x8] sm:$0xff] %v76_v6 }
  0xcf   :  { %v100_v7 = vpop.f32.mrf.mxu0 }

</bundles_post_ra>
